<compile_context>
chip_gen: v5e
topology: v5e:2x2
jax: 0.10.0
libtpu: 0.0.40
codegen_flags: <defaults>
</compile_context>

<pallas_src>
import functools

import numpy as np
import jax
import jax.numpy as jnp
from jax.experimental import pallas as pl
from jax.experimental.pallas import tpu as pltpu


# ------------------------------ fused kernel --------------------------------

def _cnn_fused_kernel(xi_ref, xv_ref, d0_ref,
                      wvi_ref, wvv_ref, bvm_ref,
                      sbn1_ref, bbn1_ref,
                      p1_ref, w1d_ref, b1d_ref,
                      p2_ref, w2_ref, b2_ref,
                      wd1_ref, bd1_ref, wd2_ref, bd2_ref,
                      wca_ref, wcb_ref, bc1_ref,
                      wc2_ref, bc2_ref,
                      out_ref, *, B, V, C, D, L1, E):
    f32 = jnp.float32
    M1 = B * V          # rows after visit pooling
    BL1 = B * L1        # rows after the stride-2 conv

    # ---- value_mapping: relu(xi @ W_i + xv @ W_v + b); concat folded into split weights
    h0 = jnp.dot(xi_ref[...], wvi_ref[...], preferred_element_type=f32)
    h0 = h0 + jnp.dot(xv_ref[...], wvv_ref[...], preferred_element_type=f32)
    h0 = jnp.maximum(h0 + bvm_ref[...], 0.0)          # (C*B*V, E); Dropout = identity (eval)

    # ---- visit pooling: rows are c-major -> max over C contiguous blocks of B*V rows
    pooled = h0[0:M1, :]
    for c in range(1, C):
        pooled = jnp.maximum(pooled, h0[c * M1:(c + 1) * M1, :])      # (B*V, E), rows (b, v)

    # ---- CNN-level bn1 (folded eval BatchNorm) + relu
    x = jnp.maximum(pooled * sbn1_ref[...] + bbn1_ref[...], 0.0)      # (B*V, E)

    # ---- layer1 ResidualBlock (stride 2, downsample = conv3 s2 + BN)
    # conv1 and downsample share the LHS; their BN-folded weights are concatenated
    # along N, so each tap is one (BL1, E) x (E, 2E) matmul.
    acc = jnp.zeros((BL1, 2 * E), f32)
    for t in range(3):
        xg = jnp.dot(p1_ref[t], x, preferred_element_type=f32)        # row select + zero pad
        acc = acc + jnp.dot(xg, w1d_ref[t], preferred_element_type=f32)
    y = acc + b1d_ref[...]                                            # BN scales already folded
    h = jnp.maximum(y[:, :E], 0.0)                                    # conv1 + bn + relu
    resid = y[:, E:]                                                  # downsample conv + bn

    acc2 = jnp.zeros((BL1, E), f32)
    for t in range(3):
        hg = jnp.dot(p2_ref[t], h, preferred_element_type=f32)
        acc2 = acc2 + jnp.dot(hg, w2_ref[t], preferred_element_type=f32)
    blk = jnp.maximum(acc2 + b2_ref[...] + resid, 0.0)                # (B*L1, E), rows (o, b)

    # ---- adaptive max pool over length: rows are o-major -> max over L1 blocks of B rows
    pooled_len = blk[0:B, :]
    for o in range(1, L1):
        pooled_len = jnp.maximum(pooled_len, blk[o * B:(o + 1) * B, :])   # (B, E)

    # ---- dd branch: two Linear+ReLU, then max over D (rows are d-major)
    hd = jnp.maximum(jnp.dot(d0_ref[...], wd1_ref[...], preferred_element_type=f32)
                     + bd1_ref[...], 0.0)
    hd = jnp.maximum(jnp.dot(hd, wd2_ref[...], preferred_element_type=f32)
                     + bd2_ref[...], 0.0)                             # (D*B, E)
    pooled_d = hd[0:B, :]
    for k in range(1, D):
        pooled_d = jnp.maximum(pooled_d, hd[k * B:(k + 1) * B, :])    # (B, E)

    # ---- cat_output: concat folded into split weights; final (E,1) proj = lane reduce
    hc = jnp.dot(pooled_len, wca_ref[...], preferred_element_type=f32)
    hc = hc + jnp.dot(pooled_d, wcb_ref[...], preferred_element_type=f32)
    hc = jnp.maximum(hc + bc1_ref[...], 0.0)                          # (B, E)
    out = jnp.sum(hc * wc2_ref[...], axis=1, keepdims=True) + bc2_ref[...]   # (B, 1)
    out_ref[...] = out.astype(out_ref.dtype)


# --------------------------- parameter preparation --------------------------

def bn_fold(gamma, beta, mean, var, eps=1e-5):
    scale = gamma / jnp.sqrt(var + eps)
    bias = beta - mean * scale
    return scale, bias


def prepare_kernel_constants(params, B, V, D):
    """Build all eval-mode constants once: folded BN, concatenated conv weights,
    split linear weights and the conv row-selection matrices."""
    E = params['embed'].shape[1]
    L1 = (V + 2 * 1 - 3) // 2 + 1     # conv3, padding=1, stride=2

    # Row-selection matrices for the convs (built in numpy, passed as kernel inputs).
    # P1[t]: (B*L1, B*V) picks input row (b, 2o+t-1) for output row (o, b); zero = pad.
    # P2[t]: (B*L1, B*L1) picks input row (b, o+t-1) for output row (o, b).
    P1 = np.zeros((3, B * L1, B * V), np.float32)
    P2 = np.zeros((3, B * L1, B * L1), np.float32)
    for t in range(3):
        for o in range(L1):
            for b in range(B):
                iv = 2 * o + t - 1
                if 0 <= iv < V:
                    P1[t, o * B + b, b * V + iv] = 1.0
                io = o + t - 1
                if 0 <= io < L1:
                    P2[t, o * B + b, io * B + b] = 1.0

    p = params['layer1']
    s1, b1 = bn_fold(*p['bn1'])
    s2, b2 = bn_fold(*p['bn2'])
    sd, bd = bn_fold(*p['bn_d'])
    # NOTE: conv weights here are (tap, in, out). Real PyTorch Conv1d weights are
    # (out, in, tap) and must be permuted (2, 1, 0) before use.
    w1d = jnp.concatenate([p['w1'] * s1[None, None, :],
                           p['w_d'] * sd[None, None, :]], axis=2)     # (3, E, 2E)
    b1d = jnp.concatenate([b1, bd])[None, :]                          # (1, 2E)
    w2 = p['w2'] * s2[None, None, :]                                  # (3, E, E)
    sb1, bb1 = bn_fold(*params['bn1'])

    consts = (
        params['vm_w'][:E, :], params['vm_w'][E:, :], params['vm_b'][None, :],
        sb1[None, :], bb1[None, :],
        jnp.asarray(P1), w1d, b1d,
        jnp.asarray(P2), w2, b2[None, :],
        params['ddm_w1'], params['ddm_b1'][None, :],
        params['ddm_w2'], params['ddm_b2'][None, :],
        params['co_w1'][:E, :], params['co_w1'][E:, :], params['co_b1'][None, :],
        params['co_w2'][:, 0][None, :], params['co_b2'][None, :],
    )
    return tuple(jnp.asarray(c, jnp.float32) for c in consts), L1


# --------------------------------- forward ----------------------------------

@jax.jit
def cnn_forward(embed, value_embed, dd_embed, consts, index, value, dd):
    B, V, C = index.shape
    D = dd.shape[1]
    E = embed.shape[1]
    L1 = (V + 2 * 1 - 3) // 2 + 1

    # Embedding gathers stay in XLA. Row orders are chosen so every in-kernel pooling
    # is an elementwise max over contiguous row blocks (c-major / d-major).
    xi = embed[jnp.transpose(index, (2, 0, 1)).reshape(-1)].astype(jnp.float32)       # (C*B*V, E)
    xv = value_embed[jnp.transpose(value, (2, 0, 1)).reshape(-1)].astype(jnp.float32)  # (C*B*V, E)
    d0 = dd_embed[jnp.transpose(dd, (1, 0)).reshape(-1)].astype(jnp.float32)           # (D*B, E)

    kernel = functools.partial(_cnn_fused_kernel, B=B, V=V, C=C, D=D, L1=L1, E=E)
    vmem = pl.BlockSpec(memory_space=pltpu.MemorySpace.VMEM)
    n_in = 3 + len(consts)
    return pl.pallas_call(
        kernel,
        out_shape=jax.ShapeDtypeStruct((B, 1), jnp.float32),
        in_specs=[vmem] * n_in,
        out_specs=vmem,
    )(xi, xv, d0, *consts)


# ------------------------- pure-JAX reference (check) -----------------------

def _conv1d_ref(x_ble, w_tio, stride):
    # x: (B, L, E) channel-last; w: (tap, in, out); padding=1, kernel=3.
    B, L, _ = x_ble.shape
    xp = jnp.pad(x_ble, ((0, 0), (1, 1), (0, 0)))
    Lout = (L + 2 - 3) // stride + 1
    out = jnp.zeros((B, Lout, w_tio.shape[2]), jnp.float32)
    for t in range(3):
        xt = xp[:, t:t + stride * (Lout - 1) + 1:stride, :]
        out = out + jnp.einsum('ble,ef->blf', xt, w_tio[t],
                               precision=jax.lax.Precision.HIGHEST)
    return out


def cnn_forward_ref(params, index, value, dd):
    hi = jax.lax.Precision.HIGHEST
    B, V, C = index.shape
    E = params['embed'].shape[1]
    xi = params['embed'][index.reshape(-1)]
    xv = params['value_embed'][value.reshape(-1)]
    x = jnp.concatenate([xi, xv], axis=1)
    x = jax.nn.relu(jnp.dot(x, params['vm_w'], precision=hi) + params['vm_b'])
    x = x.reshape(B, V, C, E).max(axis=2)                       # visit pooling
    s, b = bn_fold(*params['bn1'])
    x = jax.nn.relu(x * s + b)                                   # (B, V, E)
    p = params['layer1']
    s1, b1 = bn_fold(*p['bn1']); s2, b2 = bn_fold(*p['bn2']); sd, bd = bn_fold(*p['bn_d'])
    resid = _conv1d_ref(x, p['w_d'], 2) * sd + bd
    h = jax.nn.relu(_conv1d_ref(x, p['w1'], 2) * s1 + b1)
    out = jax.nn.relu(_conv1d_ref(h, p['w2'], 1) * s2 + b2 + resid)
    pooled = out.max(axis=1)                                     # (B, E)
    d = params['dd_embed'][dd.reshape(-1)]
    d = jax.nn.relu(jnp.dot(d, params['ddm_w1'], precision=hi) + params['ddm_b1'])
    d = jax.nn.relu(jnp.dot(d, params['ddm_w2'], precision=hi) + params['ddm_b2'])
    d = d.reshape(B, dd.shape[1], E).max(axis=1)                 # (B, E)
    cat = jnp.concatenate([pooled, d], axis=1)
    hc = jax.nn.relu(jnp.dot(cat, params['co_w1'], precision=hi) + params['co_b1'])
    return jnp.dot(hc, params['co_w2'], precision=hi) + params['co_b2']


# --------------------------- parameter construction -------------------------

def value_embedding_data(d, split):
    vec = np.array([np.arange(split) * i for i in range(d // 2)],
                   dtype=np.float32).transpose()
    vec = vec / vec.max()
    emb = np.concatenate((np.sin(vec), np.cos(vec)), 1)
    emb[0, :d] = 0
    return jnp.asarray(emb)  # (split, d)


def init_params(key, *, embed_size, vocab_size, n_ehr, split_num, rnn_size):
    assert rnn_size == embed_size  # required for cat_output shapes to line up
    E = embed_size
    ks = list(jax.random.split(key, 32))

    def nrm(shape, i, scale=0.1):
        return scale * jax.random.normal(ks[i], shape, dtype=jnp.float32)

    def bn(i):
        return (1.0 + nrm((E,), i), nrm((E,), i + 1),
                nrm((E,), i + 2), 1.0 + 0.1 * jnp.abs(jax.random.normal(ks[i + 3], (E,))))

    return {
        'embed': nrm((vocab_size, E), 0),
        'dd_embed': nrm((n_ehr, E), 1),
        'value_embed': value_embedding_data(E, split_num + 1),
        # value_mapping: Linear(2E, E) + ReLU + Dropout
        'vm_w': nrm((2 * E, E), 2), 'vm_b': nrm((E,), 3),
        # CNN-level bn1
        'bn1': bn(4),
        # layer1: single ResidualBlock(E, E, stride=2, downsample=conv3(stride2)+BN)
        'layer1': {
            'w1': nrm((3, E, E), 8), 'bn1': bn(9),
            'w2': nrm((3, E, E), 13), 'bn2': bn(14),
            'w_d': nrm((3, E, E), 18), 'bn_d': bn(19),
        },
        # dd_mapping: Linear(E,E)+ReLU+Drop, Linear(E,E)+ReLU+Drop
        'ddm_w1': nrm((E, E), 23), 'ddm_b1': nrm((E,), 24),
        'ddm_w2': nrm((E, E), 25), 'ddm_b2': nrm((E,), 26),
        # cat_output: Linear(2E, E)+ReLU+Drop, Linear(E, 1)
        'co_w1': nrm((2 * E, E), 27), 'co_b1': nrm((E,), 28),
        'co_w2': nrm((E, 1), 29), 'co_b2': nrm((1,), 30),
    }


# ----------------------------------- main ------------------------------------

if __name__ == "__main__":
    # args: embed_size=32, rnn_size=32, vocab_size=50, n_ehr=40, split_num=15,
    #       value_embedding='embedding' (so self.embedding is nn.Embedding).
    E, VOCAB, N_EHR, SPLIT = 32, 50, 40, 15
    B, V, C, D = 2, 4, 6, 5     # batch, visits, codes-per-visit, dd codes

    key = jax.random.PRNGKey(0)
    kp, ki, kv, kd = jax.random.split(key, 4)
    params = init_params(kp, embed_size=E, vocab_size=VOCAB, n_ehr=N_EHR,
                         split_num=SPLIT, rnn_size=E)

    index = jax.random.randint(ki, (B, V, C), 0, VOCAB, dtype=jnp.int32)
    value = jax.random.randint(kv, (B, V, C), 0, SPLIT + 1, dtype=jnp.int32)
    dd = jax.random.randint(kd, (B, D), 0, N_EHR, dtype=jnp.int32)
    # `t` is unused by the reference forward; `content=None` path is taken.

    consts, _ = prepare_kernel_constants(params, B, V, D)   # one-time eval-mode folding
    out = cnn_forward(params['embed'], params['value_embed'], params['dd_embed'],
                      consts, index, value, dd)
    out = jax.block_until_ready(out)
    assert out.shape == (B, 1)

    # sanity check against a pure-JAX reference of the same eval-mode forward
    ref = cnn_forward_ref(params, index, value, dd)
    np.testing.assert_allclose(np.asarray(out), np.asarray(ref), rtol=5e-3, atol=5e-4)
    print("KERNEL_OK")
</pallas_src>

<mosaic_0001>
module attributes {stable_mosaic.version = 11 : i64} {
  func.func @_cnn_fused_kernel(%arg0: memref<48x32xf32, #tpu.memory_space<vmem>>, %arg1: memref<48x32xf32, #tpu.memory_space<vmem>>, %arg2: memref<10x32xf32, #tpu.memory_space<vmem>>, %arg3: memref<32x32xf32, #tpu.memory_space<vmem>>, %arg4: memref<32x32xf32, #tpu.memory_space<vmem>>, %arg5: memref<1x32xf32, #tpu.memory_space<vmem>>, %arg6: memref<1x32xf32, #tpu.memory_space<vmem>>, %arg7: memref<1x32xf32, #tpu.memory_space<vmem>>, %arg8: memref<3x4x8xf32, #tpu.memory_space<vmem>>, %arg9: memref<3x32x64xf32, #tpu.memory_space<vmem>>, %arg10: memref<1x64xf32, #tpu.memory_space<vmem>>, %arg11: memref<3x4x4xf32, #tpu.memory_space<vmem>>, %arg12: memref<3x32x32xf32, #tpu.memory_space<vmem>>, %arg13: memref<1x32xf32, #tpu.memory_space<vmem>>, %arg14: memref<32x32xf32, #tpu.memory_space<vmem>>, %arg15: memref<1x32xf32, #tpu.memory_space<vmem>>, %arg16: memref<32x32xf32, #tpu.memory_space<vmem>>, %arg17: memref<1x32xf32, #tpu.memory_space<vmem>>, %arg18: memref<32x32xf32, #tpu.memory_space<vmem>>, %arg19: memref<32x32xf32, #tpu.memory_space<vmem>>, %arg20: memref<1x32xf32, #tpu.memory_space<vmem>>, %arg21: memref<1x32xf32, #tpu.memory_space<vmem>>, %arg22: memref<1x1xf32, #tpu.memory_space<vmem>>, %arg23: memref<2x1xf32, #tpu.memory_space<vmem>>) attributes {dimension_semantics = [], scalar_prefetch = 0 : i64, scratch_operands = 0 : i64, tpu.core_type = #tpu.core_type<tc>} {
    %c0 = arith.constant 0 : index
    %c0_0 = arith.constant 0 : index
    %0 = vector.load %arg0[%c0, %c0_0] : memref<48x32xf32, #tpu.memory_space<vmem>>, vector<48x32xf32>
    %c0_1 = arith.constant 0 : index
    %c0_2 = arith.constant 0 : index
    %1 = vector.load %arg3[%c0_1, %c0_2] : memref<32x32xf32, #tpu.memory_space<vmem>>, vector<32x32xf32>
    %cst = arith.constant dense<0.000000e+00> : vector<48x32xf32>
    %2 = tpu.matmul %0, %1, %cst {dimension_numbers = #tpu.dot_dimension_numbers<[1], [0], [0], [1], [0, 0, 1, 1], [], []>} : vector<48x32xf32>, vector<32x32xf32>, vector<48x32xf32> -> vector<48x32xf32>
    %c0_3 = arith.constant 0 : index
    %c0_4 = arith.constant 0 : index
    %3 = vector.load %arg1[%c0_3, %c0_4] : memref<48x32xf32, #tpu.memory_space<vmem>>, vector<48x32xf32>
    %c0_5 = arith.constant 0 : index
    %c0_6 = arith.constant 0 : index
    %4 = vector.load %arg4[%c0_5, %c0_6] : memref<32x32xf32, #tpu.memory_space<vmem>>, vector<32x32xf32>
    %cst_7 = arith.constant dense<0.000000e+00> : vector<48x32xf32>
    %5 = tpu.matmul %3, %4, %cst_7 {dimension_numbers = #tpu.dot_dimension_numbers<[1], [0], [0], [1], [0, 0, 1, 1], [], []>} : vector<48x32xf32>, vector<32x32xf32>, vector<48x32xf32> -> vector<48x32xf32>
    %6 = arith.addf %2, %5 : vector<48x32xf32>
    %c0_8 = arith.constant 0 : index
    %c0_9 = arith.constant 0 : index
    %7 = vector.load %arg5[%c0_8, %c0_9] : memref<1x32xf32, #tpu.memory_space<vmem>>, vector<1x32xf32>
    %8 = vector.broadcast %7 : vector<1x32xf32> to vector<48x32xf32>
    %9 = arith.addf %6, %8 : vector<48x32xf32>
    %cst_10 = arith.constant 0.000000e+00 : f32
    %10 = vector.broadcast %cst_10 : f32 to vector<48x32xf32>
    %11 = arith.maximumf %9, %10 : vector<48x32xf32>
    %12 = vector.extract_strided_slice %11 {offsets = [0, 0], sizes = [8, 32], strides = [1, 1]} : vector<48x32xf32> to vector<8x32xf32>
    %13 = vector.extract_strided_slice %11 {offsets = [8, 0], sizes = [8, 32], strides = [1, 1]} : vector<48x32xf32> to vector<8x32xf32>
    %14 = arith.maximumf %12, %13 : vector<8x32xf32>
    %15 = vector.extract_strided_slice %11 {offsets = [16, 0], sizes = [8, 32], strides = [1, 1]} : vector<48x32xf32> to vector<8x32xf32>
    %16 = arith.maximumf %14, %15 : vector<8x32xf32>
    %17 = vector.extract_strided_slice %11 {offsets = [24, 0], sizes = [8, 32], strides = [1, 1]} : vector<48x32xf32> to vector<8x32xf32>
    %18 = arith.maximumf %16, %17 : vector<8x32xf32>
    %19 = vector.extract_strided_slice %11 {offsets = [32, 0], sizes = [8, 32], strides = [1, 1]} : vector<48x32xf32> to vector<8x32xf32>
    %20 = arith.maximumf %18, %19 : vector<8x32xf32>
    %21 = vector.extract_strided_slice %11 {offsets = [40, 0], sizes = [8, 32], strides = [1, 1]} : vector<48x32xf32> to vector<8x32xf32>
    %22 = arith.maximumf %20, %21 : vector<8x32xf32>
    %c0_11 = arith.constant 0 : index
    %c0_12 = arith.constant 0 : index
    %23 = vector.load %arg6[%c0_11, %c0_12] : memref<1x32xf32, #tpu.memory_space<vmem>>, vector<1x32xf32>
    %24 = vector.broadcast %23 : vector<1x32xf32> to vector<8x32xf32>
    %25 = arith.mulf %22, %24 : vector<8x32xf32>
    %c0_13 = arith.constant 0 : index
    %c0_14 = arith.constant 0 : index
    %26 = vector.load %arg7[%c0_13, %c0_14] : memref<1x32xf32, #tpu.memory_space<vmem>>, vector<1x32xf32>
    %27 = vector.broadcast %26 : vector<1x32xf32> to vector<8x32xf32>
    %28 = arith.addf %25, %27 : vector<8x32xf32>
    %cst_15 = arith.constant 0.000000e+00 : f32
    %29 = vector.broadcast %cst_15 : f32 to vector<8x32xf32>
    %30 = arith.maximumf %28, %29 : vector<8x32xf32>
    %cst_16 = arith.constant 0.000000e+00 : f32
    %31 = vector.broadcast %cst_16 : f32 to vector<4x64xf32>
    %c0_17 = arith.constant 0 : index
    %c0_18 = arith.constant 0 : index
    %c0_19 = arith.constant 0 : index
    %32 = vector.load %arg8[%c0_17, %c0_18, %c0_19] : memref<3x4x8xf32, #tpu.memory_space<vmem>>, vector<1x4x8xf32>
    %33 = vector.shape_cast %32 : vector<1x4x8xf32> to vector<4x8xf32>
    %cst_20 = arith.constant dense<0.000000e+00> : vector<4x32xf32>
    %34 = tpu.matmul %33, %30, %cst_20 {dimension_numbers = #tpu.dot_dimension_numbers<[1], [0], [0], [1], [0, 0, 1, 1], [], []>} : vector<4x8xf32>, vector<8x32xf32>, vector<4x32xf32> -> vector<4x32xf32>
    %c0_21 = arith.constant 0 : index
    %c0_22 = arith.constant 0 : index
    %c0_23 = arith.constant 0 : index
    %35 = vector.load %arg9[%c0_21, %c0_22, %c0_23] : memref<3x32x64xf32, #tpu.memory_space<vmem>>, vector<1x32x64xf32>
    %36 = vector.shape_cast %35 : vector<1x32x64xf32> to vector<32x64xf32>
    %cst_24 = arith.constant dense<0.000000e+00> : vector<4x64xf32>
    %37 = tpu.matmul %34, %36, %cst_24 {dimension_numbers = #tpu.dot_dimension_numbers<[1], [0], [0], [1], [0, 0, 1, 1], [], []>} : vector<4x32xf32>, vector<32x64xf32>, vector<4x64xf32> -> vector<4x64xf32>
    %38 = arith.addf %31, %37 : vector<4x64xf32>
    %c1 = arith.constant 1 : index
    %c0_25 = arith.constant 0 : index
    %c0_26 = arith.constant 0 : index
    %39 = vector.load %arg8[%c1, %c0_25, %c0_26] : memref<3x4x8xf32, #tpu.memory_space<vmem>>, vector<1x4x8xf32>
    %40 = vector.shape_cast %39 : vector<1x4x8xf32> to vector<4x8xf32>
    %cst_27 = arith.constant dense<0.000000e+00> : vector<4x32xf32>
    %41 = tpu.matmul %40, %30, %cst_27 {dimension_numbers = #tpu.dot_dimension_numbers<[1], [0], [0], [1], [0, 0, 1, 1], [], []>} : vector<4x8xf32>, vector<8x32xf32>, vector<4x32xf32> -> vector<4x32xf32>
    %c1_28 = arith.constant 1 : index
    %c0_29 = arith.constant 0 : index
    %c0_30 = arith.constant 0 : index
    %42 = vector.load %arg9[%c1_28, %c0_29, %c0_30] : memref<3x32x64xf32, #tpu.memory_space<vmem>>, vector<1x32x64xf32>
    %43 = vector.shape_cast %42 : vector<1x32x64xf32> to vector<32x64xf32>
    %cst_31 = arith.constant dense<0.000000e+00> : vector<4x64xf32>
    %44 = tpu.matmul %41, %43, %cst_31 {dimension_numbers = #tpu.dot_dimension_numbers<[1], [0], [0], [1], [0, 0, 1, 1], [], []>} : vector<4x32xf32>, vector<32x64xf32>, vector<4x64xf32> -> vector<4x64xf32>
    %45 = arith.addf %38, %44 : vector<4x64xf32>
    %c2 = arith.constant 2 : index
    %c0_32 = arith.constant 0 : index
    %c0_33 = arith.constant 0 : index
    %46 = vector.load %arg8[%c2, %c0_32, %c0_33] : memref<3x4x8xf32, #tpu.memory_space<vmem>>, vector<1x4x8xf32>
    %47 = vector.shape_cast %46 : vector<1x4x8xf32> to vector<4x8xf32>
    %cst_34 = arith.constant dense<0.000000e+00> : vector<4x32xf32>
    %48 = tpu.matmul %47, %30, %cst_34 {dimension_numbers = #tpu.dot_dimension_numbers<[1], [0], [0], [1], [0, 0, 1, 1], [], []>} : vector<4x8xf32>, vector<8x32xf32>, vector<4x32xf32> -> vector<4x32xf32>
    %c2_35 = arith.constant 2 : index
    %c0_36 = arith.constant 0 : index
    %c0_37 = arith.constant 0 : index
    %49 = vector.load %arg9[%c2_35, %c0_36, %c0_37] : memref<3x32x64xf32, #tpu.memory_space<vmem>>, vector<1x32x64xf32>
    %50 = vector.shape_cast %49 : vector<1x32x64xf32> to vector<32x64xf32>
    %cst_38 = arith.constant dense<0.000000e+00> : vector<4x64xf32>
    %51 = tpu.matmul %48, %50, %cst_38 {dimension_numbers = #tpu.dot_dimension_numbers<[1], [0], [0], [1], [0, 0, 1, 1], [], []>} : vector<4x32xf32>, vector<32x64xf32>, vector<4x64xf32> -> vector<4x64xf32>
    %52 = arith.addf %45, %51 : vector<4x64xf32>
    %c0_39 = arith.constant 0 : index
    %c0_40 = arith.constant 0 : index
    %53 = vector.load %arg10[%c0_39, %c0_40] : memref<1x64xf32, #tpu.memory_space<vmem>>, vector<1x64xf32>
    %54 = vector.broadcast %53 : vector<1x64xf32> to vector<4x64xf32>
    %55 = arith.addf %52, %54 : vector<4x64xf32>
    %56 = vector.extract_strided_slice %55 {offsets = [0, 0], sizes = [4, 32], strides = [1, 1]} : vector<4x64xf32> to vector<4x32xf32>
    %cst_41 = arith.constant 0.000000e+00 : f32
    %57 = vector.broadcast %cst_41 : f32 to vector<4x32xf32>
    %58 = arith.maximumf %56, %57 : vector<4x32xf32>
    %59 = vector.extract_strided_slice %55 {offsets = [0, 32], sizes = [4, 32], strides = [1, 1]} : vector<4x64xf32> to vector<4x32xf32>
    %cst_42 = arith.constant 0.000000e+00 : f32
    %60 = vector.broadcast %cst_42 : f32 to vector<4x32xf32>
    %c0_43 = arith.constant 0 : index
    %c0_44 = arith.constant 0 : index
    %c0_45 = arith.constant 0 : index
    %61 = vector.load %arg11[%c0_43, %c0_44, %c0_45] : memref<3x4x4xf32, #tpu.memory_space<vmem>>, vector<1x4x4xf32>
    %62 = vector.shape_cast %61 : vector<1x4x4xf32> to vector<4x4xf32>
    %cst_46 = arith.constant dense<0.000000e+00> : vector<4x32xf32>
    %63 = tpu.matmul %62, %58, %cst_46 {dimension_numbers = #tpu.dot_dimension_numbers<[1], [0], [0], [1], [0, 0, 1, 1], [], []>} : vector<4x4xf32>, vector<4x32xf32>, vector<4x32xf32> -> vector<4x32xf32>
    %c0_47 = arith.constant 0 : index
    %c0_48 = arith.constant 0 : index
    %c0_49 = arith.constant 0 : index
    %64 = vector.load %arg12[%c0_47, %c0_48, %c0_49] : memref<3x32x32xf32, #tpu.memory_space<vmem>>, vector<1x32x32xf32>
    %65 = vector.shape_cast %64 : vector<1x32x32xf32> to vector<32x32xf32>
    %cst_50 = arith.constant dense<0.000000e+00> : vector<4x32xf32>
    %66 = tpu.matmul %63, %65, %cst_50 {dimension_numbers = #tpu.dot_dimension_numbers<[1], [0], [0], [1], [0, 0, 1, 1], [], []>} : vector<4x32xf32>, vector<32x32xf32>, vector<4x32xf32> -> vector<4x32xf32>
    %67 = arith.addf %60, %66 : vector<4x32xf32>
    %c1_51 = arith.constant 1 : index
    %c0_52 = arith.constant 0 : index
    %c0_53 = arith.constant 0 : index
    %68 = vector.load %arg11[%c1_51, %c0_52, %c0_53] : memref<3x4x4xf32, #tpu.memory_space<vmem>>, vector<1x4x4xf32>
    %69 = vector.shape_cast %68 : vector<1x4x4xf32> to vector<4x4xf32>
    %cst_54 = arith.constant dense<0.000000e+00> : vector<4x32xf32>
    %70 = tpu.matmul %69, %58, %cst_54 {dimension_numbers = #tpu.dot_dimension_numbers<[1], [0], [0], [1], [0, 0, 1, 1], [], []>} : vector<4x4xf32>, vector<4x32xf32>, vector<4x32xf32> -> vector<4x32xf32>
    %c1_55 = arith.constant 1 : index
    %c0_56 = arith.constant 0 : index
    %c0_57 = arith.constant 0 : index
    %71 = vector.load %arg12[%c1_55, %c0_56, %c0_57] : memref<3x32x32xf32, #tpu.memory_space<vmem>>, vector<1x32x32xf32>
    %72 = vector.shape_cast %71 : vector<1x32x32xf32> to vector<32x32xf32>
    %cst_58 = arith.constant dense<0.000000e+00> : vector<4x32xf32>
    %73 = tpu.matmul %70, %72, %cst_58 {dimension_numbers = #tpu.dot_dimension_numbers<[1], [0], [0], [1], [0, 0, 1, 1], [], []>} : vector<4x32xf32>, vector<32x32xf32>, vector<4x32xf32> -> vector<4x32xf32>
    %74 = arith.addf %67, %73 : vector<4x32xf32>
    %c2_59 = arith.constant 2 : index
    %c0_60 = arith.constant 0 : index
    %c0_61 = arith.constant 0 : index
    %75 = vector.load %arg11[%c2_59, %c0_60, %c0_61] : memref<3x4x4xf32, #tpu.memory_space<vmem>>, vector<1x4x4xf32>
    %76 = vector.shape_cast %75 : vector<1x4x4xf32> to vector<4x4xf32>
    %cst_62 = arith.constant dense<0.000000e+00> : vector<4x32xf32>
    %77 = tpu.matmul %76, %58, %cst_62 {dimension_numbers = #tpu.dot_dimension_numbers<[1], [0], [0], [1], [0, 0, 1, 1], [], []>} : vector<4x4xf32>, vector<4x32xf32>, vector<4x32xf32> -> vector<4x32xf32>
    %c2_63 = arith.constant 2 : index
    %c0_64 = arith.constant 0 : index
    %c0_65 = arith.constant 0 : index
    %78 = vector.load %arg12[%c2_63, %c0_64, %c0_65] : memref<3x32x32xf32, #tpu.memory_space<vmem>>, vector<1x32x32xf32>
    %79 = vector.shape_cast %78 : vector<1x32x32xf32> to vector<32x32xf32>
    %cst_66 = arith.constant dense<0.000000e+00> : vector<4x32xf32>
    %80 = tpu.matmul %77, %79, %cst_66 {dimension_numbers = #tpu.dot_dimension_numbers<[1], [0], [0], [1], [0, 0, 1, 1], [], []>} : vector<4x32xf32>, vector<32x32xf32>, vector<4x32xf32> -> vector<4x32xf32>
    %81 = arith.addf %74, %80 : vector<4x32xf32>
    %c0_67 = arith.constant 0 : index
    %c0_68 = arith.constant 0 : index
    %82 = vector.load %arg13[%c0_67, %c0_68] : memref<1x32xf32, #tpu.memory_space<vmem>>, vector<1x32xf32>
    %83 = vector.broadcast %82 : vector<1x32xf32> to vector<4x32xf32>
    %84 = arith.addf %81, %83 : vector<4x32xf32>
    %85 = arith.addf %84, %59 : vector<4x32xf32>
    %cst_69 = arith.constant 0.000000e+00 : f32
    %86 = vector.broadcast %cst_69 : f32 to vector<4x32xf32>
    %87 = arith.maximumf %85, %86 : vector<4x32xf32>
    %88 = vector.extract_strided_slice %87 {offsets = [0, 0], sizes = [2, 32], strides = [1, 1]} : vector<4x32xf32> to vector<2x32xf32>
    %89 = vector.extract_strided_slice %87 {offsets = [2, 0], sizes = [2, 32], strides = [1, 1]} : vector<4x32xf32> to vector<2x32xf32>
    %90 = arith.maximumf %88, %89 : vector<2x32xf32>
    %c0_70 = arith.constant 0 : index
    %c0_71 = arith.constant 0 : index
    %91 = vector.load %arg2[%c0_70, %c0_71] : memref<10x32xf32, #tpu.memory_space<vmem>>, vector<10x32xf32>
    %c0_72 = arith.constant 0 : index
    %c0_73 = arith.constant 0 : index
    %92 = vector.load %arg14[%c0_72, %c0_73] : memref<32x32xf32, #tpu.memory_space<vmem>>, vector<32x32xf32>
    %cst_74 = arith.constant dense<0.000000e+00> : vector<10x32xf32>
    %93 = tpu.matmul %91, %92, %cst_74 {dimension_numbers = #tpu.dot_dimension_numbers<[1], [0], [0], [1], [0, 0, 1, 1], [], []>} : vector<10x32xf32>, vector<32x32xf32>, vector<10x32xf32> -> vector<10x32xf32>
    %c0_75 = arith.constant 0 : index
    %c0_76 = arith.constant 0 : index
    %94 = vector.load %arg15[%c0_75, %c0_76] : memref<1x32xf32, #tpu.memory_space<vmem>>, vector<1x32xf32>
    %95 = vector.broadcast %94 : vector<1x32xf32> to vector<10x32xf32>
    %96 = arith.addf %93, %95 : vector<10x32xf32>
    %cst_77 = arith.constant 0.000000e+00 : f32
    %97 = vector.broadcast %cst_77 : f32 to vector<10x32xf32>
    %98 = arith.maximumf %96, %97 : vector<10x32xf32>
    %c0_78 = arith.constant 0 : index
    %c0_79 = arith.constant 0 : index
    %99 = vector.load %arg16[%c0_78, %c0_79] : memref<32x32xf32, #tpu.memory_space<vmem>>, vector<32x32xf32>
    %cst_80 = arith.constant dense<0.000000e+00> : vector<10x32xf32>
    %100 = tpu.matmul %98, %99, %cst_80 {dimension_numbers = #tpu.dot_dimension_numbers<[1], [0], [0], [1], [0, 0, 1, 1], [], []>} : vector<10x32xf32>, vector<32x32xf32>, vector<10x32xf32> -> vector<10x32xf32>
    %c0_81 = arith.constant 0 : index
    %c0_82 = arith.constant 0 : index
    %101 = vector.load %arg17[%c0_81, %c0_82] : memref<1x32xf32, #tpu.memory_space<vmem>>, vector<1x32xf32>
    %102 = vector.broadcast %101 : vector<1x32xf32> to vector<10x32xf32>
    %103 = arith.addf %100, %102 : vector<10x32xf32>
    %cst_83 = arith.constant 0.000000e+00 : f32
    %104 = vector.broadcast %cst_83 : f32 to vector<10x32xf32>
    %105 = arith.maximumf %103, %104 : vector<10x32xf32>
    %106 = vector.extract_strided_slice %105 {offsets = [0, 0], sizes = [2, 32], strides = [1, 1]} : vector<10x32xf32> to vector<2x32xf32>
    %107 = vector.extract_strided_slice %105 {offsets = [2, 0], sizes = [2, 32], strides = [1, 1]} : vector<10x32xf32> to vector<2x32xf32>
    %108 = arith.maximumf %106, %107 : vector<2x32xf32>
    %109 = vector.extract_strided_slice %105 {offsets = [4, 0], sizes = [2, 32], strides = [1, 1]} : vector<10x32xf32> to vector<2x32xf32>
    %110 = arith.maximumf %108, %109 : vector<2x32xf32>
    %111 = vector.extract_strided_slice %105 {offsets = [6, 0], sizes = [2, 32], strides = [1, 1]} : vector<10x32xf32> to vector<2x32xf32>
    %112 = arith.maximumf %110, %111 : vector<2x32xf32>
    %113 = vector.extract_strided_slice %105 {offsets = [8, 0], sizes = [2, 32], strides = [1, 1]} : vector<10x32xf32> to vector<2x32xf32>
    %114 = arith.maximumf %112, %113 : vector<2x32xf32>
    %c0_84 = arith.constant 0 : index
    %c0_85 = arith.constant 0 : index
    %115 = vector.load %arg18[%c0_84, %c0_85] : memref<32x32xf32, #tpu.memory_space<vmem>>, vector<32x32xf32>
    %cst_86 = arith.constant dense<0.000000e+00> : vector<2x32xf32>
    %116 = tpu.matmul %90, %115, %cst_86 {dimension_numbers = #tpu.dot_dimension_numbers<[1], [0], [0], [1], [0, 0, 1, 1], [], []>} : vector<2x32xf32>, vector<32x32xf32>, vector<2x32xf32> -> vector<2x32xf32>
    %c0_87 = arith.constant 0 : index
    %c0_88 = arith.constant 0 : index
    %117 = vector.load %arg19[%c0_87, %c0_88] : memref<32x32xf32, #tpu.memory_space<vmem>>, vector<32x32xf32>
    %cst_89 = arith.constant dense<0.000000e+00> : vector<2x32xf32>
    %118 = tpu.matmul %114, %117, %cst_89 {dimension_numbers = #tpu.dot_dimension_numbers<[1], [0], [0], [1], [0, 0, 1, 1], [], []>} : vector<2x32xf32>, vector<32x32xf32>, vector<2x32xf32> -> vector<2x32xf32>
    %119 = arith.addf %116, %118 : vector<2x32xf32>
    %c0_90 = arith.constant 0 : index
    %c0_91 = arith.constant 0 : index
    %120 = vector.load %arg20[%c0_90, %c0_91] : memref<1x32xf32, #tpu.memory_space<vmem>>, vector<1x32xf32>
    %121 = vector.broadcast %120 : vector<1x32xf32> to vector<2x32xf32>
    %122 = arith.addf %119, %121 : vector<2x32xf32>
    %cst_92 = arith.constant 0.000000e+00 : f32
    %123 = vector.broadcast %cst_92 : f32 to vector<2x32xf32>
    %124 = arith.maximumf %122, %123 : vector<2x32xf32>
    %c0_93 = arith.constant 0 : index
    %c0_94 = arith.constant 0 : index
    %125 = vector.load %arg21[%c0_93, %c0_94] : memref<1x32xf32, #tpu.memory_space<vmem>>, vector<1x32xf32>
    %126 = vector.broadcast %125 : vector<1x32xf32> to vector<2x32xf32>
    %127 = arith.mulf %124, %126 : vector<2x32xf32>
    %cst_95 = arith.constant dense<0.000000e+00> : vector<2xf32>
    %128 = vector.multi_reduction <add>, %127, %cst_95 [1] : vector<2x32xf32> to vector<2xf32>
    %129 = vector.shape_cast %128 : vector<2xf32> to vector<2x1xf32>
    %c0_96 = arith.constant 0 : index
    %c0_97 = arith.constant 0 : index
    %130 = vector.load %arg22[%c0_96, %c0_97] : memref<1x1xf32, #tpu.memory_space<vmem>>, vector<1x1xf32>
    %131 = vector.broadcast %130 : vector<1x1xf32> to vector<2x1xf32>
    %132 = arith.addf %129, %131 : vector<2x1xf32>
    %c0_98 = arith.constant 0 : index
    %c0_99 = arith.constant 0 : index
    %133 = vector.load %arg23[%c0_98, %c0_99] : memref<2x1xf32, #tpu.memory_space<vmem>>, vector<2x1xf32>
    tpu.vector_store %arg23[%c0_98, %c0_99], %132 {strides = array<i32>} : memref<2x1xf32, #tpu.memory_space<vmem>>, vector<2x1xf32>,
    return
  }
}

</mosaic_0001>

<bundles_post_ra>
// kernel: cnn_forward.1
= control target key start
LH: loop header
LB: loop body
LE: loop exit
PB: predicated region body
PF: predicated region fallthrough
CT: control target
= control target key end

     0   :  { %vm96_vm0 = vcmask 261120   ;;  %vm236_vm1 = vcmask 64512   ;;  %vm405_vm2 = vcmask 1043456   ;;  %vm401_vm3 = vcmask 31744   ;;  %s1204_s4 = inlined_call_operand.vmem [shape: f32[32,32], index: 4, kind: input, shape index: {}]   ;;  %s1205_s3 = inlined_call_operand.vmem [shape: f32[32,32], index: 3, kind: input, shape index: {}]   ;;  %s1206_s1 = inlined_call_operand.vmem [shape: f32[48,32], index: 1, kind: input, shape index: {}]   ;;  %s1207_s0 = inlined_call_operand.vmem [shape: f32[48,32], index: 0, kind: input, shape index: {}]   ;;  %s1208_s5 = inlined_call_operand.vmem [shape: f32[1,32], index: 5, kind: input, shape index: {}]   ;;  %s1209_s6 = inlined_call_operand.vmem [shape: f32[1,32], index: 6, kind: input, shape index: {}]   ;;  %s1210_s7 = inlined_call_operand.vmem [shape: f32[1,32], index: 7, kind: input, shape index: {}]   ;;  %s1211_s8 = inlined_call_operand.vmem [shape: f32[3,4,8], index: 8, kind: input, shape index: {}]   ;;  %s1212_s9 = inlined_call_operand.vmem [shape: f32[3,32,64], index: 9, kind: input, shape index: {}]   ;;  %s1213_s10 = inlined_call_operand.vmem [shape: f32[1,64], index: 10, kind: input, shape index: {}]   ;;  %s1214_s11 = inlined_call_operand.vmem [shape: f32[3,4,4], index: 11, kind: input, shape index: {}]   ;;  %s1215_s12 = inlined_call_operand.vmem [shape: f32[3,32,32], index: 12, kind: input, shape index: {}]   ;;  %s1216_s14 = inlined_call_operand.vmem [shape: f32[32,32], index: 14, kind: input, shape index: {}]   ;;  %s1217_s2 = inlined_call_operand.vmem [shape: f32[10,32], index: 2, kind: input, shape index: {}]   ;;  %s1218_s15 = inlined_call_operand.vmem [shape: f32[1,32], index: 15, kind: input, shape index: {}]   ;;  %s1219_s13 = inlined_call_operand.vmem [shape: f32[1,32], index: 13, kind: input, shape index: {}]   ;;  %s1220_s16 = inlined_call_operand.vmem [shape: f32[32,32], index: 16, kind: input, shape index: {}]   ;;  %s1221_s19 = inlined_call_operand.vmem [shape: f32[32,32], index: 19, kind: input, shape index: {}]   ;;  %s1222_s18 = inlined_call_operand.vmem [shape: f32[32,32], index: 18, kind: input, shape index: {}]   ;;  %s1223_s17 = inlined_call_operand.vmem [shape: f32[1,32], index: 17, kind: input, shape index: {}]   ;;  %s1224_s20 = inlined_call_operand.vmem [shape: f32[1,32], index: 20, kind: input, shape index: {}]   ;;  %s1225_s21 = inlined_call_operand.vmem [shape: f32[1,32], index: 21, kind: input, shape index: {}]   ;;  %s1226_s22 = inlined_call_operand.<no memory space> [shape: f32[1,1], index: 22, kind: input, shape index: {}]   ;;  %s1227_s23 = inlined_call_operand.vmem [shape: f32[2,1], index: 23, kind: output, shape index: {}]  }
   0x1   :  { %1233 = sst [smem:[#allocation3_spill]] %s1204_s4  ;;  %v767_v63 = vld [vmem:[%s1212_s9 + $0x38] sm:$0xff]  ;;  %vm734_vm4 = vcmask 254976   ;;  %vm743_vm5 = vcmask 1024  }
   0x2   :  { %1234 = sst [smem:[#allocation4_spill]] %s1205_s3 }
   0x3   :  { %1235 = sst [smem:[#allocation5_spill]] %s1206_s1 }
   0x4   :  { %1236 = sst [smem:[#allocation6_spill]] %s1207_s0 }
   0x5   :  { %1237 = sst [smem:[#allocation7_spill]] %s1208_s5 }
   0x6   :  { %1238 = sst [smem:[#allocation8_spill]] %s1209_s6 }
   0x7   :  { %1239 = sst [smem:[#allocation9_spill]] %s1210_s7 }
   0x8   :  { %1240 = sst [smem:[#allocation10_spill]] %s1211_s8 }
   0x9   :  { %1241 = sst [smem:[#allocation11_spill]] %s1219_s13 }
   0xa   :  { %s1242_s24 = sld [smem:[#allocation3_spill]] }
   0xb   :  { %s1243_s13 = sld [smem:[#allocation4_spill]] }
   0xc   :  { %s1244_s3 = sld [smem:[#allocation5_spill]] }
   0xd   :  { %s1245_s7 = sld [smem:[#allocation6_spill]] }
   0xe   :  { %s1246_s4 = sld [smem:[#allocation7_spill]] }
   0xf   :  { %s1247_s30 = sld [smem:[#allocation8_spill]] }
  0x10   :  { %v95_v0 = vld [vmem:[%s1242_s24 + $0x18] sm:$0xff]  ;;  %v94_v2 = vld [vmem:[%s1242_s24 + $0x10] sm:$0xff]  ;;  %v93_v4 = vld [vmem:[%s1242_s24 + $0x8] sm:$0xff]  ;;  %s1248_s26 = sld [smem:[#allocation9_spill]] }
  0x11   :  { %v85_v1 = vld [vmem:[%s1243_s13 + $0x18] sm:$0xff]  ;;  %127 = vmatpush.msra.mxu0 %v95_v0  ;;  %v84_v3 = vld [vmem:[%s1243_s13 + $0x10] sm:$0xff]  ;;  %v83_v5 = vld [vmem:[%s1243_s13 + $0x8] sm:$0xff]  ;;  %s1249_s27 = sld [smem:[#allocation10_spill]] }
  0x12   :  { %180 = vmatpush.msra.mxu1 %v85_v1  ;;  %v92_v6 = vld [vmem:[%s1242_s24] sm:$0xff]  ;;  %v87_v10 = vld [vmem:[%s1244_s3 + $0x8] sm:$0xff]  ;;  %v88_v12 = vld [vmem:[%s1244_s3 + $0x10] sm:$0xff]  ;;  %s813_s24 = smov 96  }
  0x13   :  { %128 = vmatpush.msra.mxu0 %v94_v2  ;;  %v82_v7 = vld [vmem:[%s1243_s13] sm:$0xff]  ;;  %v77_v11 = vld [vmem:[%s1245_s7 + $0x8] sm:$0xff]  ;;  %v78_v13 = vld [vmem:[%s1245_s7 + $0x10] sm:$0xff] }
  0x14   :  { %181 = vmatpush.msra.mxu1 %v84_v3  ;;  %v86_v8 = vld [vmem:[%s1244_s3] sm:$0xff]  ;;  %v89_v14 = vld [vmem:[%s1244_s3 + $0x18] sm:$0xff]  ;;  %v91_v18 = vld [vmem:[%s1244_s3 + $0x28] sm:$0xff] }
  0x15   :  { %129 = vmatpush.msra.mxu0 %v93_v4  ;;  %v76_v9 = vld [vmem:[%s1245_s7] sm:$0xff]  ;;  %v79_v15 = vld [vmem:[%s1245_s7 + $0x18] sm:$0xff]  ;;  %v81_v19 = vld [vmem:[%s1245_s7 + $0x28] sm:$0xff] }
  0x16   :  { %182 = vmatpush.msra.mxu1 %v83_v5  ;;  %v90_v16 = vld [vmem:[%s1244_s3 + $0x20] sm:$0xff]  ;;  %v263_v0 = vld [vmem:[%s1212_s9 + $0x18] sm:$0xff]  ;;  %v766_v1 = vld [vmem:[%s1212_s9 + $0x30] sm:$0xff]  ;;  %s1250_s3 = sld [smem:[#allocation11_spill]] }
  0x17   :  { %130 = vmatpush.msra.mxu0 %v92_v6  ;;  %v80_v17 = vld [vmem:[%s1245_s7 + $0x20] sm:$0xff]  ;;  %v262_v2 = vld [vmem:[%s1212_s9 + $0x10] sm:$0xff]  ;;  %v765_v3 = vld [vmem:[%s1212_s9 + $0x28] sm:$0xff] }
  0x18   :  { %183 = vmatpush.msra.mxu1 %v82_v7  ;;  %749 = vmatmul.msk.f32.vlgmr.msra.gmra.mxu0 %vm96_vm0, %v86_v8  ;;  %v803_v30 = vld [vmem:[%s1246_s4] ss:$0 sm:$0xff]  ;;  %v762_v62 = vld [vmem:[%s1249_s27 + $0x4] sm:$0xf]  ;;  %v261_v4 = vld [vmem:[%s1212_s9 + $0x8] sm:$0xff] }
  0x19   :  { %755 = vmatmul.msk.f32.vlgmr.msra.gmra.mxu1 %vm96_vm0, %v76_v9  ;;  %v804_v55 = vld [vmem:[%s1247_s30] ss:$0 sm:$0xff]  ;;  %v770_v9 = vld [vmem:[%s1249_s27 + $0x8] sm:$0xf] }
  0x1a   :  { %v805_v57 = vld [vmem:[%s1248_s26] ss:$0 sm:$0xff] }
  0x1b   :  { %v235_v61 = vld [vmem:[%s1249_s27] sm:$0xf] }
  0x1c   :  { %v764_v5 = vld [vmem:[%s1212_s9 + $0x20] sm:$0xff] }
  0x1d   :  { %v260_v6 = vld [vmem:[%s1212_s9] sm:$0xff] }
  0x20   :  { %750 = vmatmul.msk.f32.gmra.mxu0 %vm96_vm0, %v87_v10  ;;  %v775_v10 = vld [vmem:[%s1212_s9 + $0x58] sm:$0xff] }
  0x21   :  { %756 = vmatmul.msk.f32.gmra.mxu1 %vm96_vm0, %v77_v11  ;;  %v774_v11 = vld [vmem:[%s1212_s9 + $0x50] sm:$0xff] }
  0x28   :  { %751 = vmatmul.msk.f32.gmra.mxu0 %vm96_vm0, %v88_v12  ;;  %v773_v12 = vld [vmem:[%s1212_s9 + $0x48] sm:$0xff] }
  0x29   :  { %757 = vmatmul.msk.f32.gmra.mxu1 %vm96_vm0, %v78_v13  ;;  %v772_v13 = vld [vmem:[%s1212_s9 + $0x40] sm:$0xff] }
  0x30   :  { %752 = vmatmul.msk.f32.gmra.mxu0 %vm96_vm0, %v89_v14 }
  0x31   :  { %758 = vmatmul.msk.f32.gmra.mxu1 %vm96_vm0, %v79_v15 }
  0x38   :  { %753 = vmatmul.msk.f32.gmra.mxu0 %vm96_vm0, %v90_v16 }
  0x39   :  { %759 = vmatmul.msk.f32.gmra.mxu1 %vm96_vm0, %v80_v17 }
  0x40   :  { %754 = vmatmul.msk.f32.gmra.mxu0 %vm96_vm0, %v91_v18  ;;  %v806_v18 = vld [vmem:[%s1213_s10] ss:$0 sm:$0xff] }
  0x41   :  { %760 = vmatmul.msk.f32.gmra.mxu1 %vm96_vm0, %v81_v19 }
  0x95   :  { %v132_v20 = vpop.f32.mrf.mxu0 }
  0x96   :  { %v185_v21 = vpop.f32.mrf.mxu1 }
  0x97   :  { %v186_v29 = vadd.f32 %v185_v21, %v132_v20 }
  0x99   :  { %v207_v36 = vadd.f32 %v803_v30, %v186_v29  ;;  %v432_v29 = vld [vmem:[%s1215_s12 + $0x18] sm:$0xff] }
  0x9b   :  { %v213_v41 = vmax.f32 %v207_v36, 0.0  ;;  %v582_v36 = vld [vmem:[%s1216_s14 + $0x10] sm:$0xff] }
  0x9d   :  { %v135_v22 = vpop.f32.mrf.mxu0 }
  0x9e   :  { %v188_v23 = vpop.f32.mrf.mxu1 }
  0x9f   :  { %v189_v28 = vadd.f32 %v188_v23, %v135_v22  ;;  %v779_v23 = vld [vmem:[%s1214_s11 + $0x4] sm:$0xf] }
  0xa1   :  { %v208_v32 = vadd.f32 %v803_v30, %v189_v28  ;;  %v782_v28 = vld [vmem:[%s1215_s12 + $0x20] sm:$0xff] }
  0xa3   :  { %v214_v39 = vmax.f32 %v208_v32, 0.0  ;;  %v429_v32 = vld [vmem:[%s1215_s12] sm:$0xff] }
  0xa5   :  { %v138_v24 = vpop.f32.mrf.mxu0  ;;  %v219_v44 = vmax.f32 %v213_v41, %v214_v39  ;;  %v788_v39 = vld [vmem:[%s1214_s11 + $0x8] sm:$0xf] }
  0xa6   :  { %v191_v25 = vpop.f32.mrf.mxu1  ;;  %v579_v41 = vld [vmem:[%s1217_s2 + $0x8] sm:$0x3] }
  0xa7   :  { %v192_v31 = vadd.f32 %v191_v25, %v138_v24  ;;  %v785_v24 = vld [vmem:[%s1215_s12 + $0x38] sm:$0xff]  ;;  %v400_v25 = vld [vmem:[%s1214_s11] sm:$0xf] }
  0xa9   :  { %v209_v37 = vadd.f32 %v803_v30, %v192_v31  ;;  %v430_v31 = vld [vmem:[%s1215_s12 + $0x8] sm:$0xff] }
  0xab   :  { %v215_v42 = vmax.f32 %v209_v37, 0.0  ;;  %v581_v37 = vld [vmem:[%s1216_s14 + $0x8] sm:$0xff] }
  0xad   :  { %v141_v26 = vpop.f32.mrf.mxu0  ;;  %v220_v48 = vmax.f32 %v219_v44, %v215_v42  ;;  %v794_v42 = vld [vmem:[%s1215_s12 + $0x58] sm:$0xff]  ;;  %v792_v44 = vld [vmem:[%s1215_s12 + $0x48] sm:$0xff] }
  0xae   :  { %v194_v27 = vpop.f32.mrf.mxu1 }
  0xaf   :  { %v195_v33 = vadd.f32 %v194_v27, %v141_v26  ;;  %v784_v26 = vld [vmem:[%s1215_s12 + $0x30] sm:$0xff]  ;;  %v783_v27 = vld [vmem:[%s1215_s12 + $0x28] sm:$0xff] }
  0xb1   :  { %v210_v40 = vadd.f32 %v803_v30, %v195_v33  ;;  %v583_v33 = vld [vmem:[%s1216_s14 + $0x18] sm:$0xff] }
  0xb3   :  { %v216_v45 = vmax.f32 %v210_v40, 0.0  ;;  %v578_v40 = vld [vmem:[%s1217_s2] sm:$0xff] }
  0xb5   :  { %v144_v34 = vpop.f32.mrf.mxu0  ;;  %v221_v51 = vmax.f32 %v220_v48, %v216_v45  ;;  %v791_v45 = vld [vmem:[%s1215_s12 + $0x40] sm:$0xff]  ;;  %v620_v48 = vld [vmem:[%s1220_s16 + $0x8] sm:$0xff] }
  0xb6   :  { %v197_v35 = vpop.f32.mrf.mxu1 }
  0xb7   :  { %v198_v38 = vadd.f32 %v197_v35, %v144_v34 }
  0xb9   :  { %v211_v43 = vadd.f32 %v803_v30, %v198_v38  ;;  %v580_v38 = vld [vmem:[%s1216_s14] sm:$0xff] }
  0xbb   :  { %v217_v49 = vmax.f32 %v211_v43, 0.0  ;;  %v793_v43 = vld [vmem:[%s1215_s12 + $0x50] sm:$0xff] }
  0xbd   :  { %v147_v46 = vpop.f32.mrf.mxu0  ;;  %v222_v53 = vmax.f32 %v221_v51, %v217_v49  ;;  %v619_v49 = vld [vmem:[%s1220_s16] sm:$0xff]  ;;  %v672_v51 = vld [vmem:[%s1222_s18 + $0x18] sm:$0xff] }
  0xbe   :  { %v200_v47 = vpop.f32.mrf.mxu1  ;;  %715 = vmatpush.msrb.mxu1 %v672_v51 }
  0xbf   :  { %v201_v50 = vadd.f32 %v200_v47, %v147_v46  ;;  %v622_v46 = vld [vmem:[%s1220_s16 + $0x18] sm:$0xff]  ;;  %v621_v47 = vld [vmem:[%s1220_s16 + $0x10] sm:$0xff] }
  0xc1   :  { %v212_v52 = vadd.f32 %v803_v30, %v201_v50  ;;  %v431_v30 = vld [vmem:[%s1215_s12 + $0x10] sm:$0xff]  ;;  %v676_v50 = vld [vmem:[%s1221_s19 + $0x18] sm:$0xff] }
  0xc2   :  { %692 = vmatpush.msrb.mxu0 %v676_v50 }
  0xc3   :  { %v218_v54 = vmax.f32 %v212_v52, 0.0  ;;  %v675_v52 = vld [vmem:[%s1221_s19 + $0x10] sm:$0xff] }
  0xc4   :  { %693 = vmatpush.msrb.mxu0 %v675_v52 }
  0xc5   :  { %v223_v56 = vmax.f32 %v222_v53, %v218_v54  ;;  %v671_v53 = vld [vmem:[%s1222_s18 + $0x10] sm:$0xff] }
  0xc6   :  { %716 = vmatpush.msrb.mxu1 %v671_v53 }
  0xc7   :  { %v228_v58 = vmul.f32 %v804_v55, %v223_v56  ;;  %v807_v56 = vld [vmem:[%s1218_s15] ss:$0 sm:$0xff] }
  0xc9   :  { %v233_v59 = vadd.f32 %v805_v57, %v228_v58 }
  0xcb   :  { %v234_v60 = vmax.f32 %v233_v59, 0.0 }
  0xcd   :  { %255 = vmatpush.msra.mxu2 %v234_v60  ;;  %284 = vmatpush.msra.mxu3 %v234_v60 }
  0xce   :  { %761 = vmatmul.msk.f32.vlgmr.msra.gmra.mxu2 %vm236_vm1, %v235_v61  ;;  %763 = vmatmul.msk.f32.vlgmr.msra.gmra.mxu3 %vm236_vm1, %v762_v62 }
  0xcf   :  { %309 = vmatpush.msrb.mxu2 %v767_v63  ;;  %332 = vmatpush.msrb.mxu3 %v263_v0  ;;  %v670_v63 = vld [vmem:[%s1222_s18 + $0x8] sm:$0xff] }
  0xd0   :  { %v674_v0 = vld [vmem:[%s1221_s19 + $0x8] sm:$0xff]  ;;  %717 = vmatpush.msrb.mxu1 %v670_v63 }
  0xd1   :  { %310 = vmatpush.msrb.mxu2 %v766_v1  ;;  %333 = vmatpush.msrb.mxu3 %v262_v2  ;;  %v669_v1 = vld [vmem:[%s1222_s18] sm:$0xff] }
  0xd2   :  { %694 = vmatpush.msrb.mxu0 %v674_v0  ;;  %718 = vmatpush.msrb.mxu1 %v669_v1 }
  0xd3   :  { %311 = vmatpush.msrb.mxu2 %v765_v3  ;;  %334 = vmatpush.msrb.mxu3 %v261_v4  ;;  %v673_v3 = vld [vmem:[%s1221_s19] sm:$0xff] }
  0xd4   :  { %695 = vmatpush.msrb.mxu0 %v673_v3 }
  0xd5   :  { %312 = vmatpush.msrb.mxu2 %v764_v5  ;;  %335 = vmatpush.msrb.mxu3 %v260_v6  ;;  %v808_v5 = vld [vmem:[%s1250_s3] ss:$0 sm:$0xff] }
  0xd7   :  { %360 = vmatpush.msra.mxu2 %v234_v60  ;;  %385 = vmatpush.msra.mxu3 %v775_v10 }
  0xd9   :  { %386 = vmatpush.msra.mxu3 %v774_v11 }
  0xdb   :  { %387 = vmatpush.msra.mxu3 %v773_v12 }
  0xdd   :  { %388 = vmatpush.msra.mxu3 %v772_v13  ;;  %v809_v13 = vld [vmem:[%s1223_s17] ss:$0 sm:$0xff] }
 0x151   :  { %v257_v7 = vpop.f32.mrf.mxu2  ;;  %v286_v8 = vpop.f32.mrf.mxu3 }
 0x152   :  { %768 = vmatmul.msk.f32.vlgmr.msrb.gmra.mxu2 %vm96_vm0, %v286_v8  ;;  %769 = vmatmul.msk.f32.vlgmr.msrb.gmra.mxu3 %vm96_vm0, %v257_v7 }
 0x15a   :  { %771 = vmatmul.msk.f32.vlgmr.msra.gmra.mxu2 %vm236_vm1, %v770_v9 }
 0x1d5   :  { %v314_v14 = vpop.f32.mrf.mxu2  ;;  %v337_v16 = vpop.f32.mrf.mxu3 }
 0x1d6   :  { %v338_v17 = vadd.f32 %v337_v16, %v314_v14 }
 0x1dd   :  { %v362_v15 = vpop.f32.mrf.mxu2 }
 0x1de   :  { %776 = vmatmul.msk.f32.vlgmr.msra.gmra.mxu3 %vm96_vm0, %v362_v15 }
 0x261   :  { %v390_v19 = vpop.f32.mrf.mxu3 }
 0x262   :  { %v393_v20 = vadd.f32 %v390_v19, %v338_v17 }
 0x264   :  { %v398_v21 = vadd.f32 %v806_v18, %v393_v20 }
 0x266   :  { %569 = vrot.lane.b32.xlu0 %v398_v21, %s813_s24  ;;  %v399_v22 = vmax.f32 %v398_v21, 0.0 }
 0x268   :  { %777 = vmatpush.msk.msrb.mxu2 %vm405_vm2, %v399_v22  ;;  %780 = vmatpush.msk.msrb.mxu3 %vm405_vm2, %v399_v22 }
 0x269   :  { %781 = vmatmul.msk.f32.vlgmr.msrb.gmra.mxu3 %vm401_vm3, %v779_v23  ;;  %778 = vmatmul.msk.f32.vlgmr.msrb.gmra.mxu2 %vm401_vm3, %v400_v25 }
 0x26a   :  { %478 = vmatpush.msra.mxu2 %v785_v24  ;;  %501 = vmatpush.msra.mxu3 %v432_v29  ;;  %v810_v29 = vld [vmem:[%s1224_s20] ss:$0 sm:$0xff] }
 0x26c   :  { %479 = vmatpush.msra.mxu2 %v784_v26  ;;  %502 = vmatpush.msra.mxu3 %v431_v30 }
 0x26e   :  { %480 = vmatpush.msra.mxu2 %v783_v27  ;;  %503 = vmatpush.msra.mxu3 %v430_v31 }
 0x270   :  { %481 = vmatpush.msra.mxu2 %v782_v28  ;;  %504 = vmatpush.msra.mxu3 %v429_v32  ;;  %v28_v28 = vstv %s1226_s22 }
 0x271   :  { %29 = vst [vmem:[#allocation2] sm:$0x1] %v28_v28 }
 0x272   :  { %789 = vmatpush.msk.msrb.mxu2 %vm405_vm2, %v399_v22  ;;  %554 = vmatpush.msrb.mxu3 %v794_v42 }
 0x274   :  { %555 = vmatpush.msrb.mxu3 %v793_v43 }
 0x276   :  { %556 = vmatpush.msrb.mxu3 %v792_v44 }
 0x278   :  { %557 = vmatpush.msrb.mxu3 %v791_v45 }
 0x2d8   :  { %v570_v9 = vpop.permute.xlu0 %569 }
 0x2ec   :  { %v455_v34 = vpop.f32.mrf.mxu3  ;;  %v426_v35 = vpop.f32.mrf.mxu2 }
 0x2ed   :  { %786 = vmatmul.msk.f32.vlgmr.msra.gmra.mxu2 %vm96_vm0, %v455_v34  ;;  %787 = vmatmul.msk.f32.vlgmr.msra.gmra.mxu3 %vm96_vm0, %v426_v35  ;;  %v811_v34 = vld [vmem:[%s1225_s21] ss:$0 sm:$0xff] }
 0x2ee   :  { %606 = vmatpush.msra.mxu2 %v583_v33  ;;  %645 = vmatpush.msra.mxu3 %v622_v46 }
 0x2f0   :  { %607 = vmatpush.msra.mxu2 %v582_v36  ;;  %646 = vmatpush.msra.mxu3 %v621_v47 }
 0x2f2   :  { %608 = vmatpush.msra.mxu2 %v581_v37  ;;  %647 = vmatpush.msra.mxu3 %v620_v48 }
 0x2f4   :  { %609 = vmatpush.msra.mxu2 %v580_v38  ;;  %648 = vmatpush.msra.mxu3 %v619_v49  ;;  %v812_v38 = vld [vmem:[#allocation2] ss:$0 sm:$0xff] }
 0x2f5   :  { %790 = vmatmul.msk.f32.vlgmr.msrb.gmra.mxu2 %vm401_vm3, %v788_v39 }
 0x2fd   :  { %796 = vmatmul.msk.f32.vlgmr.msra.gmra.mxu2 %vm96_vm0, %v578_v40 }
 0x305   :  { %797 = vmatmul.msk.f32.gmra.mxu2 %vm96_vm0, %v579_v41 }
 0x370   :  { %v483_v54 = vpop.f32.mrf.mxu2  ;;  %v506_v2 = vpop.f32.mrf.mxu3 }
 0x371   :  { %v507_v4 = vadd.f32 %v506_v2, %v483_v54 }
 0x378   :  { %v531_v55 = vpop.f32.mrf.mxu2 }
 0x379   :  { %795 = vmatmul.msk.f32.vlgmr.msrb.gmra.mxu3 %vm96_vm0, %v531_v55 }
 0x380   :  { %v611_v57 = vpop.f32.mrf.mxu2 }
 0x381   :  { %v612_v58 = vadd.f32 %v807_v56, %v611_v57 }
 0x383   :  { %v617_v59 = vmax.f32 %v612_v58, 0.0 }
 0x385   :  { %798 = vmatmul.msk.f32.vlgmr.msra.gmra.mxu3 %vm96_vm0, %v617_v59 }
 0x388   :  { %v614_v60 = vpop.f32.mrf.mxu2 }
 0x389   :  { %v615_v61 = vadd.f32 %v807_v56, %v614_v60 }
 0x38b   :  { %v618_v62 = vmax.f32 %v615_v61, 0.0 }
 0x38d   :  { %799 = vmatmul.msk.f32.gmra.mxu3 %vm96_vm0, %v618_v62 }
 0x3fc   :  { %v559_v6 = vpop.f32.mrf.mxu3 }
 0x3fd   :  { %v562_v7 = vadd.f32 %v559_v6, %v507_v4 }
 0x3ff   :  { %v567_v8 = vadd.f32 %v808_v5, %v562_v7 }
 0x401   :  { %v572_v10 = vadd.f32 %v570_v9, %v567_v8 }
 0x403   :  { %v573_v11 = vmax.f32 %v572_v10, 0.0 }
 0x405   :  { %v575_v12 = vrot.slane %v573_v11, 2 }
 0x407   :  { %v577_v14 = vmax.f32 %v573_v11, %v575_v12 }
 0x408   :  { %v650_v15 = vpop.f32.mrf.mxu3 }
 0x409   :  { %v651_v16 = vadd.f32 %v809_v13, %v650_v15  ;;  %801 = vmatmul.msk.f32.vlgmr.msrb.gmra.mxu1 %vm96_vm0, %v577_v14 }
 0x40b   :  { %v656_v17 = vmax.f32 %v651_v16, 0.0 }
 0x40d   :  { %v659_v18 = vrot.slane %v656_v17, 2  ;;  %v662_v20 = vrot.slane %v656_v17, 4  ;;  %v665_v24 = vrot.slane %v656_v17, 6 }
 0x40f   :  { %v661_v19 = vmax.f32 %v656_v17, %v659_v18 }
 0x410   :  { %v653_v21 = vpop.f32.mrf.mxu3 }
 0x411   :  { %v654_v22 = vadd.f32 %v809_v13, %v653_v21  ;;  %v664_v23 = vmax.f32 %v661_v19, %v662_v20 }
 0x413   :  { %v657_v25 = vmax.f32 %v654_v22, 0.0  ;;  %v667_v26 = vmax.f32 %v664_v23, %v665_v24 }
 0x415   :  { %v668_v27 = vmax.f32 %v667_v26, %v657_v25 }
 0x417   :  { %800 = vmatmul.msk.f32.vlgmr.msrb.gmra.mxu0 %vm96_vm0, %v668_v27 }
 0x486   :  { %v720_v30 = vpop.f32.mrf.mxu1 }
 0x494   :  { %v697_v31 = vpop.f32.mrf.mxu0 }
 0x495   :  { %v721_v32 = vadd.f32 %v720_v30, %v697_v31 }
 0x497   :  { %v727_v33 = vadd.f32 %v810_v29, %v721_v32 }
 0x499   :  { %v728_v35 = vmax.f32 %v727_v33, 0.0 }
 0x49b   :  { %v733_v36 = vmul.f32 %v811_v34, %v728_v35 }
 0x49d   :  { %v735_v37 = vsel %vm734_vm4, %v733_v36, 0.0 }
 0x49e   :  { %736 = vadd.xlane.f32.xlu0 %v735_v37 }
 0x511   :  { %v737_v39 = vpop.xlane.xlu0 %736 }
 0x512   :  { %v742_v40 = vadd.f32 %v812_v38, %v737_v39 }
 0x514   :  { %744 = vst.msk [vmem:[%s1227_s23] sm:$0x3] %vm743_vm5, %v742_v40 }

</bundles_post_ra>
